<compile_context>
chip_gen: v5e
topology: v5e:2x2
jax: 0.10.0
libtpu: 0.0.40
codegen_flags: <defaults>
</compile_context>

<pallas_src>
import functools

import jax
import jax.numpy as jnp
from jax.experimental import pallas as pl
from jax.experimental.pallas import tpu as pltpu


# ----------------------------------------------------------------------------
# Kernel bodies
# ----------------------------------------------------------------------------

def _write_sin_cos(out_ref, sin_x, cos_x):
    """Store [sin | cos] into out_ref ([TS, H])."""
    half = sin_x.shape[-1]
    if half % 128 == 0:
        # Lane-aligned halves -> one full-tile, lane-dense store.
        out_ref[...] = jnp.concatenate([sin_x, cos_x], axis=-1).astype(out_ref.dtype)
    else:
        # Odd widths (H/2 not a multiple of 128): two static slice stores
        # avoid the cross-lane shuffles a misaligned concat would need.
        out_ref[:, :half] = sin_x.astype(out_ref.dtype)
        out_ref[:, half:] = cos_x.astype(out_ref.dtype)


def _pos_emb_exact_kernel(pos_ref, inv_ref, out_ref):
    """General path (arbitrary pos_seq values).

    pos_ref: [TS, 1] f32, inv_ref: [1, H/2] f32, out_ref: [TS, H] out_dtype.
    """
    sinusoid = pos_ref[...] * inv_ref[...]            # torch.ger -> [TS, H/2]
    _write_sin_cos(out_ref, jnp.sin(sinusoid), jnp.cos(sinusoid))


def _pos_emb_arange_kernel(inv_ref, out_ref):
    """Fast path for pos_seq == arange(S): angle-addition decomposition.

    pos = base + 128*j + r  (base = tile start, j in [0, TS/128), r in [0,128))
    sin/cos are only evaluated on the small q- and r-tables; the full tile is
    reconstructed with VPU FMAs (4 VALU slots/bundle -> essentially free
    relative to the single EUP slot the direct path would saturate).
    Requires TS % 128 == 0 (guaranteed by the wrapper).
    """
    ts = out_ref.shape[0]
    half = inv_ref.shape[1]
    nblk = ts // 128

    inv = inv_ref[...]                                           # [1, half]
    base = (pl.program_id(0) * ts).astype(jnp.float32)           # tile row offset

    # r-table: sin/cos(r * inv_freq), r in [0, 128)  -> 2*128*half EUP ops/tile
    r = jax.lax.broadcasted_iota(jnp.int32, (128, 1), 0).astype(jnp.float32)
    ang_r = r * inv                                              # [128, half]
    sin_r, cos_r = jnp.sin(ang_r), jnp.cos(ang_r)

    # q-table: sin/cos((base + 128*j) * inv_freq), j in [0, TS/128)
    j = jax.lax.broadcasted_iota(jnp.int32, (nblk, 1), 0).astype(jnp.float32)
    ang_q = (base + 128.0 * j) * inv                             # [nblk, half]
    sin_q, cos_q = jnp.sin(ang_q), jnp.cos(ang_q)

    # Angle addition: sin(a+b) = sin a cos b + cos a sin b, etc. (pure VPU).
    sq, cq = sin_q[:, None, :], cos_q[:, None, :]                # [nblk, 1, half]
    sr, cr = sin_r[None, :, :], cos_r[None, :, :]                # [1, 128, half]
    sin_o = (sq * cr + cq * sr).reshape(ts, half)                # [TS, half]
    cos_o = (cq * cr - sq * sr).reshape(ts, half)

    _write_sin_cos(out_ref, sin_o, cos_o)


# ----------------------------------------------------------------------------
# Tiling
# ----------------------------------------------------------------------------

def _row_multiple(out_bytes):
    # Native sublane tiling of the output dtype: f32 -> 8, bf16 -> 16, 1B -> 32.
    return {4: 8, 2: 16, 1: 32}.get(out_bytes, 8)


def _choose_tile(S, H, out_bytes, row_mult):
    """Pick the sequence tile TS (a multiple of row_mult, or TS == S)."""
    total = S * H * out_bytes
    # Tiny outputs: one grid step beats the ~0.35us/step pipeline overhead and
    # there is not enough work to be worth splitting across two TensorCores.
    if (total <= (256 << 10) or S <= 2 * row_mult) and (
            S % row_mult == 0 or row_mult <= 8):
        return S
    # Otherwise: ~1 MiB-class tiles, and at least 2 grid steps so the
    # "parallel" grid axis can be sharded across v7x's two TensorCores.
    ts = min(1024, (S + 1) // 2)
    ts = max(row_mult, (ts // row_mult) * row_mult)
    return min(ts, S)


# ----------------------------------------------------------------------------
# Public wrapper (forward pass of the PyTorch module)
# ----------------------------------------------------------------------------

@functools.partial(jax.jit, static_argnames=("bsz", "out_dtype", "assume_arange"))
def positional_embedding(pos_seq, inv_freq, bsz=None, out_dtype=jnp.float32,
                         assume_arange=False):
    """pos_seq: [S] f32, inv_freq: [H/2] f32 -> [1, S, H] (or [bsz, S, H]).

    assume_arange=True enables the low-transcendental fast path; it is only
    valid when pos_seq == arange(S) (the module's typical usage).
    """
    S = pos_seq.shape[0]
    half = inv_freq.shape[0]
    H = 2 * half
    out_bytes = jnp.dtype(out_dtype).itemsize

    inv2d = inv_freq.reshape(1, half).astype(jnp.float32)

    use_fast = bool(assume_arange) and S >= 128
    row_mult = 128 if use_fast else _row_multiple(out_bytes)
    TS = _choose_tile(S, H, out_bytes, row_mult)
    grid = (pl.cdiv(S, TS),)

    out_shape = jax.ShapeDtypeStruct((S, H), out_dtype)
    out_spec = pl.BlockSpec((TS, H), lambda i: (i, 0))
    compiler_params = pltpu.CompilerParams(
        # Shards the sequence axis across TensorCores on v7x (grid >= 2 for
        # anything but tiny outputs).  No vmem_limit override: working set is
        # only a few MiB, well inside the default scoped VMEM on all chips.
        dimension_semantics=("parallel",),
    )

    if use_fast:
        cost = pl.CostEstimate(
            flops=8 * S * half,  # angle-addition FMAs
            transcendentals=2 * half * (128 * grid[0] + pl.cdiv(S, 128)),
            bytes_accessed=half * 4 + S * H * out_bytes,
        )
        pos_emb = pl.pallas_call(
            _pos_emb_arange_kernel,
            out_shape=out_shape,
            grid=grid,
            in_specs=[pl.BlockSpec((1, half), lambda i: (0, 0))],
            out_specs=out_spec,
            compiler_params=compiler_params,
            cost_estimate=cost,
        )(inv2d)
    else:
        pos2d = pos_seq.reshape(S, 1).astype(jnp.float32)
        cost = pl.CostEstimate(
            flops=S * half,                      # outer-product multiplies
            transcendentals=S * H,               # one sin + one cos per element
            bytes_accessed=S * 4 + half * 4 + S * H * out_bytes,
        )
        pos_emb = pl.pallas_call(
            _pos_emb_exact_kernel,
            out_shape=out_shape,
            grid=grid,
            in_specs=[
                pl.BlockSpec((TS, 1), lambda i: (i, 0)),
                pl.BlockSpec((1, half), lambda i: (0, 0)),
            ],
            out_specs=out_spec,
            compiler_params=compiler_params,
            cost_estimate=cost,
        )(pos2d, inv2d)

    pos_emb = pos_emb[None, :, :]                     # [1, S, H]
    if bsz is not None:
        # torch .expand() is a view; keep the broadcast lazy for the consumer.
        pos_emb = jnp.broadcast_to(pos_emb, (bsz, S, H))
    return pos_emb


# ----------------------------------------------------------------------------
# Helpers / reference / self-test
# ----------------------------------------------------------------------------

def make_inv_freq(hidden_size):
    # inv_freq = 1 / 10000 ** (arange(0, hidden_size, 2) / hidden_size)
    return 1.0 / (10000.0 ** (jnp.arange(0.0, hidden_size, 2.0) / hidden_size))


def _reference(pos_seq, inv_freq, bsz=None):
    sinusoid = pos_seq[:, None] * inv_freq[None, :]
    ref = jnp.concatenate([jnp.sin(sinusoid), jnp.cos(sinusoid)], axis=-1)
    ref = ref[None, :, :]
    if bsz is not None:
        ref = jnp.broadcast_to(ref, (bsz,) + ref.shape[1:])
    return ref


if __name__ == "__main__":
    key = jax.random.PRNGKey(0)

    # --- small check matching the module's typical usage (seq=8, hidden=32) --
    hidden_size, seq_len, bsz = 32, 8, 2
    inv_freq = make_inv_freq(hidden_size)
    pos_seq = jnp.arange(seq_len, dtype=jnp.float32)

    out = jax.block_until_ready(positional_embedding(pos_seq, inv_freq, bsz=bsz))
    ref = _reference(pos_seq, inv_freq, bsz=bsz)
    assert out.shape == (bsz, seq_len, hidden_size)
    assert jnp.allclose(out, ref, atol=1e-5, rtol=1e-5)

    # --- arbitrary (non-arange) positions: exact path ------------------------
    pos_rand = jax.random.uniform(key, (seq_len,), dtype=jnp.float32) * 50.0
    out_r = jax.block_until_ready(positional_embedding(pos_rand, inv_freq))
    assert jnp.allclose(out_r, _reference(pos_rand, inv_freq), atol=1e-5, rtol=1e-5)

    # --- bf16 output (halved writeback for v5e/v6e consumers) ----------------
    out_bf16 = jax.block_until_ready(
        positional_embedding(pos_seq, inv_freq, out_dtype=jnp.bfloat16))
    assert out_bf16.dtype == jnp.bfloat16
    assert jnp.allclose(out_bf16.astype(jnp.float32),
                        _reference(pos_seq, inv_freq), atol=1e-2, rtol=1e-2)

    # --- larger tiled checks (grid > 1): exact path and arange fast path -----
    hidden_size2, seq_len2 = 256, 2048
    inv_freq2 = make_inv_freq(hidden_size2)
    pos_seq2 = jnp.arange(seq_len2, dtype=jnp.float32)
    ref2 = _reference(pos_seq2, inv_freq2)

    out_exact = jax.block_until_ready(positional_embedding(pos_seq2, inv_freq2))
    assert out_exact.shape == (1, seq_len2, hidden_size2)
    assert jnp.allclose(out_exact, ref2, atol=1e-5, rtol=1e-5)

    out_fast = jax.block_until_ready(
        positional_embedding(pos_seq2, inv_freq2, assume_arange=True))
    assert out_fast.shape == (1, seq_len2, hidden_size2)
    # Angle-addition differs from the direct f32 product by O(theta*eps)
    # (a few e-4 at theta ~ 2048); values are in [-1, 1].
    assert jnp.allclose(out_fast, ref2, atol=5e-3, rtol=0.0)

    print("KERNEL_OK")
</pallas_src>

<mosaic_0001>
module attributes {stable_mosaic.version = 11 : i64} {
  func.func @_pos_emb_exact_kernel(%arg0: i32, %arg1: memref<8x1xf32, #tpu.memory_space<vmem>>, %arg2: memref<1x16xf32, #tpu.memory_space<vmem>>, %arg3: memref<8x32xf32, #tpu.memory_space<vmem>>) attributes {dimension_semantics = [#tpu.dimension_semantics<parallel>], iteration_bounds = array<i64: 1>, scalar_prefetch = 0 : i64, scratch_operands = 0 : i64, tpu.core_type = #tpu.core_type<tc>, window_params = [{transform_indices = @transform_0, window_bounds = array<i64: 8, 1>}, {pipeline_mode = #tpu.pipeline_mode<synchronous>, transform_indices = @transform_1, window_bounds = array<i64: 1, 16>}, {transform_indices = @transform_2, window_bounds = array<i64: 8, 32>}]} {
    %c0 = arith.constant 0 : index
    %c0_0 = arith.constant 0 : index
    %0 = vector.load %arg1[%c0, %c0_0] : memref<8x1xf32, #tpu.memory_space<vmem>>, vector<8x1xf32>
    %c0_1 = arith.constant 0 : index
    %c0_2 = arith.constant 0 : index
    %1 = vector.load %arg2[%c0_1, %c0_2] : memref<1x16xf32, #tpu.memory_space<vmem>>, vector<1x16xf32>
    %2 = vector.broadcast %0 : vector<8x1xf32> to vector<8x16xf32>
    %3 = vector.broadcast %1 : vector<1x16xf32> to vector<8x16xf32>
    %4 = arith.mulf %2, %3 : vector<8x16xf32>
    %5 = math.sin %4 : vector<8x16xf32>
    %6 = math.cos %4 : vector<8x16xf32>
    %c0_3 = arith.constant 0 : index
    %c0_4 = arith.constant 0 : index
    %7 = vector.load %arg3[%c0_3, %c0_4] : memref<8x32xf32, #tpu.memory_space<vmem>>, vector<8x16xf32>
    tpu.vector_store %arg3[%c0_3, %c0_4], %5 {strides = array<i32>} : memref<8x32xf32, #tpu.memory_space<vmem>>, vector<8x16xf32>,
    %c0_5 = arith.constant 0 : index
    %c16 = arith.constant 16 : index
    %8 = vector.load %arg3[%c0_5, %c16] : memref<8x32xf32, #tpu.memory_space<vmem>>, vector<8x16xf32>
    tpu.vector_store %arg3[%c0_5, %c16], %6 {strides = array<i32>} : memref<8x32xf32, #tpu.memory_space<vmem>>, vector<8x16xf32>,
    return
  }
  func.func @transform_0(%arg0: i32) -> (i32, i32) {
    %c0_i32 = arith.constant 0 : i32
    %c0_i32_0 = arith.constant 0 : i32
    return %arg0, %c0_i32 : i32, i32
  }
  func.func @transform_1(%arg0: i32) -> (i32, i32) {
    %c0_i32 = arith.constant 0 : i32
    %c0_i32_0 = arith.constant 0 : i32
    %c0_i32_1 = arith.constant 0 : i32
    return %c0_i32, %c0_i32_0 : i32, i32
  }
  func.func @transform_2(%arg0: i32) -> (i32, i32) {
    %c0_i32 = arith.constant 0 : i32
    %c0_i32_0 = arith.constant 0 : i32
    return %arg0, %c0_i32 : i32, i32
  }
}

</mosaic_0001>

<bundles_post_ra>
// kernel: positional_embedding.1
= control target key start
LH: loop header
LB: loop body
LE: loop exit
PB: predicated region body
PF: predicated region fallthrough
CT: control target
= control target key end

     0   :  { %v359_v0 = vmov 0   ;;  %v360_v16 = vmov 683565275   ;;  %v361_v18 = vmov 2475754826   ;;  %s445_s0 = inlined_call_operand.vmem [shape: f32[8,1], index: 0, kind: input, shape index: {}]   ;;  %s446_s1 = inlined_call_operand.vmem [shape: f32[1,16], index: 1, kind: input, shape index: {}]   ;;  %s447_s2 = inlined_call_operand.vmem [shape: f32[8,32], index: 2, kind: output, shape index: {}]  }
   0x1   :  { %357 = vset.pattern.permute.xlu0 %v359_v0  ;;  %v11_v1 = vld [vmem:[%s445_s0] sm:$0xff]  ;;  %v362_v20 = vmov 2131351028   ;;  %v363_v22 = vmov 2102212464   ;;  %s366_s0 = smov 16  }
   0x2   :  { %15 = vperm.xlu0 %357, %v11_v1   ;;  %v358_v2 = vld [vmem:[%s446_s1] ss:$0 sm:$0xff]  ;;  %v364_v27 = vmov 920167782   ;;  %v365_v30 = vmov 1326507024  }
  0x74   :  { %v16_v3 = vpop.permute.xlu0 %15 }
  0x75   :  { %v389_v4 = vmul.f32 %v358_v2, %v16_v3 }
  0x77   :  { %v25_v5 = vand.u32 2139095040, %v389_v4  ;;  %v22_v7 = vand.u32 2147483647, %v389_v4  ;;  %vm24_vm12 = vcmp.lt.s32.totalorder %v389_v4, 0 }
  0x79   :  { %v26_v6 = vshrl.u32 %v25_v5, 23  ;;  %v29_v10 = vand.u32 8388607, %v22_v7  ;;  %vm23_vm13 = vcmp.le.f32.partialorder %v22_v7, 0.7853982 }
  0x7b   :  { %v343_v8 = vadd.s32 4294967169, %v26_v6  ;;  %v30_v13 = vor.u32 8388608, %v29_v10 }
  0x7d   :  { %v32_v9 = vadd.s32 1, %v343_v8  ;;  %v397_v32 = vshll.u32 %v30_v13, 8 }
  0x7f   :  { %vm33_vm0 = vcmp.gt.s32.totalorder %v32_v9, 0  ;;  %v71_v44 = vand.u32 65535, %v397_v32  ;;  %v72_v46 = vshrl.u32 %v397_v32, 16 }
  0x80   :  { %v34_v11 = vsel %vm33_vm0, %v32_v9, 0 }
  0x81   :  { %v36_v12 = vand.u32 31, %v34_v11  ;;  %v395_v14 = vshrl.u32 %v34_v11, 5 }
  0x83   :  { %v37_v15 = vsub.s32 32, %v36_v12  ;;  %v39_v17 = vshll.u32 %v360_v16, %v36_v12  ;;  %v42_v19 = vshll.u32 %v361_v18, %v36_v12  ;;  %v45_v21 = vshll.u32 %v362_v20, %v36_v12 }
  0x84   :  { %v48_v23 = vshll.u32 %v363_v22, %v36_v12  ;;  %v51_v29 = vshll.u32 %v364_v27, %v36_v12  ;;  %vm54_vm1 = vcmp.lt.s32.totalorder %v395_v14, 1  ;;  %vm57_vm2 = vcmp.lt.s32.totalorder %v395_v14, 4 }
  0x85   :  { %v40_v24 = vshrl.u32 %v361_v18, %v37_v15  ;;  %v43_v25 = vshrl.u32 %v362_v20, %v37_v15  ;;  %v46_v26 = vshrl.u32 %v363_v22, %v37_v15  ;;  %v49_v28 = vshrl.u32 %v364_v27, %v37_v15 }
  0x86   :  { %v52_v31 = vshrl.u32 %v365_v30, %v37_v15  ;;  %vm56_vm3 = vcmp.lt.s32.totalorder %v395_v14, 3  ;;  %vm55_vm4 = vcmp.lt.s32.totalorder %v395_v14, 2  ;;  %v38_v9 = vshrl.u32 %v360_v16, %v37_v15 }
  0x87   :  { %v41_v33 = vor.u32 %v40_v24, %v39_v17  ;;  %v44_v34 = vor.u32 %v43_v25, %v42_v19  ;;  %v47_v35 = vor.u32 %v46_v26, %v45_v21  ;;  %v50_v36 = vor.u32 %v49_v28, %v48_v23 }
  0x88   :  { %v53_v37 = vor.u32 %v52_v31, %v51_v29 }
  0x89   :  { %v62_v38 = vsel %vm54_vm1, %v41_v33, %v44_v34  ;;  %v63_v39 = vsel %vm57_vm2, %v50_v36, 920167782  ;;  %v66_v40 = vsel %vm54_vm1, %v44_v34, %v47_v35  ;;  %v59_v5 = vsel %vm57_vm2, %v47_v35, 2102212464 }
  0x8a   :  { %v64_v41 = vsel %vm56_vm3, %v47_v35, %v63_v39  ;;  %v67_v42 = vsel %vm57_vm2, %v53_v37, 1326507024  ;;  %v58_v18 = vsel %vm54_vm1, %v38_v9, %v41_v33  ;;  %v60_v19 = vsel %vm56_vm3, %v44_v34, %v59_v5 }
  0x8b   :  { %v68_v43 = vsel %vm56_vm3, %v50_v36, %v67_v42  ;;  %v65_v45 = vsel %vm55_vm4, %v62_v38, %v64_v41  ;;  %v61_v16 = vsel %vm55_vm4, %v58_v18, %v60_v19 }
  0x8c   :  { %v69_v47 = vsel %vm55_vm4, %v66_v40, %v68_v43  ;;  %v95_v48 = vand.u32 65535, %v65_v45  ;;  %v96_v49 = vshrl.u32 %v65_v45, 16  ;;  %v115_v28 = vmul.u32 %v397_v32, %v61_v16 }
  0x8d   :  { %v73_v50 = vand.u32 65535, %v69_v47  ;;  %v74_v51 = vshrl.u32 %v69_v47, 16  ;;  %vm331_vm4 = vcmask 130048  }
  0x8e   :  { %v98_v52 = vmul.u32 %v96_v49, %v71_v44  ;;  %v99_v53 = vmul.u32 %v95_v48, %v72_v46  ;;  %v97_v56 = vmul.u32 %v95_v48, %v71_v44  ;;  %v100_v60 = vmul.u32 %v96_v49, %v72_v46 }
  0x8f   :  { %v76_v54 = vmul.u32 %v74_v51, %v71_v44  ;;  %v77_v55 = vmul.u32 %v73_v50, %v72_v46  ;;  %v75_v58 = vmul.u32 %v73_v50, %v71_v44  ;;  %v78_v61 = vmul.u32 %v74_v51, %v72_v46 }
  0x90   :  { %v101_v57 = vshll.u32 %v98_v52, 16  ;;  %v103_v62 = vshll.u32 %v99_v53, 16  ;;  %v102_v13 = vshrl.u32 %v98_v52, 16  ;;  %v104_v22 = vshrl.u32 %v99_v53, 16 }
  0x91   :  { %v79_v59 = vshll.u32 %v76_v54, 16  ;;  %v81_v1 = vshll.u32 %v77_v55, 16  ;;  %v80_v20 = vshrl.u32 %v76_v54, 16  ;;  %v82_v24 = vshrl.u32 %v77_v55, 16 }
  0x92   :  { %vm105_vm5 = vc.u32 %v97_v56, %v101_v57  ;;  %v107_v63 = vadd.s32 %v101_v57, %v97_v56 }
  0x93   :  { %vm83_vm6 = vc.u32 %v75_v58, %v79_v59  ;;  %v85_v2 = vadd.s32 %v79_v59, %v75_v58  ;;  %v106_v3 = vsel %vm105_vm5, 1, %v359_v0  ;;  %vm165_vm5 = vweird.f32 %v389_v4 }
  0x94   :  { %v84_v6 = vsel %vm83_vm6, 1, %v359_v0  ;;  %v108_v8 = vadd.s32 %v106_v3, %v100_v60  ;;  %vm109_vm7 = vc.u32 %v107_v63, %v103_v62  ;;  %vm337_vm6 = vcmask 261248  }
  0x95   :  { %v86_v10 = vadd.s32 %v84_v6, %v78_v61  ;;  %vm87_vm8 = vc.u32 %v85_v2, %v81_v1  ;;  %v110_v11 = vsel %vm109_vm7, 1, %v359_v0 }
  0x96   :  { %v88_v12 = vsel %vm87_vm8, 1, %v359_v0  ;;  %v112_v17 = vadd.s32 %v110_v11, %v108_v8  ;;  %v111_v0 = vadd.s32 %v107_v63, %v103_v62 }
  0x97   :  { %v90_v21 = vadd.s32 %v88_v12, %v86_v10 }
  0x98   :  { %v113_v23 = vadd.s32 %v112_v17, %v102_v13 }
  0x99   :  { %v91_v15 = vadd.s32 %v90_v21, %v80_v20 }
  0x9a   :  { %v114_v25 = vadd.s32 %v113_v23, %v104_v22 }
  0x9b   :  { %v92_v26 = vadd.s32 %v91_v15, %v82_v24 }
  0x9c   :  { %v118_v27 = vadd.s32 1, %v114_v25 }
  0x9d   :  { %vm117_vm9 = vc.u32 %v92_v26, %v111_v0  ;;  %v116_v40 = vadd.s32 %v111_v0, %v92_v26 }
  0x9e   :  { %v119_v29 = vsel %vm117_vm9, %v118_v27, %v114_v25 }
  0x9f   :  { %v120_v30 = vadd.s32 %v119_v29, %v115_v28 }
  0xa1   :  { %v121_v31 = vadd.s32 536870912, %v120_v30 }
  0xa3   :  { %v122_v33 = vshrl.u32 %v121_v31, 30 }
  0xa5   :  { %v123_v34 = vshll.u32 %v122_v33, 30  ;;  %v146_v53 = vsub.s32 4, %v122_v33 }
  0xa7   :  { %v124_v35 = vsub.s32 %v120_v30, %v123_v34  ;;  %v147_v58 = vsel %vm24_vm12, %v146_v53, %v122_v33 }
  0xa8   :  { %v149_v61 = vsel %vm23_vm13, 0, %v147_v58 }
  0xa9   :  { %vm125_vm10 = vcmp.lt.s32.totalorder %v124_v35, 0  ;;  %v126_v36 = vsub.s32 0, %v124_v35  ;;  %v166_v3 = vadd.s32 3, %v149_v61  ;;  %v321_v9 = vand.u32 3, %v149_v61 }
  0xab   :  { %v127_v37 = vsel %vm125_vm10, %v126_v36, %v124_v35  ;;  %v167_v10 = vand.u32 3, %v166_v3  ;;  %vm322_vm14 = vcmp.lt.s32.totalorder %v321_v9, 2  ;;  %vm323_vm15 = vcmp.eq.s32.totalorder %v321_v9, 0 }
  0xac   :  { %v128_v38 = vclz %v127_v37  ;;  %vm326_vm0 = vcmp.eq.s32.totalorder %v321_v9, 2 }
  0xad   :  { %vm168_vm1 = vcmp.lt.s32.totalorder %v167_v10, 2  ;;  %vm169_vm2 = vcmp.eq.s32.totalorder %v167_v10, 0  ;;  %vm172_vm3 = vcmp.eq.s32.totalorder %v167_v10, 2 }
  0xae   :  { %v344_v39 = vadd.s32 4294967294, %v128_v38 }
  0xb0   :  { %vm345_vm11 = vcmp.lt.s32.totalorder %v344_v39, 0 }
  0xb1   :  { %v131_v14 = vsel %vm345_vm11, 0, %v344_v39 }
  0xb2   :  { %v132_v41 = vsub.s32 32, %v131_v14  ;;  %v136_v42 = vsub.s32 4294967266, %v131_v14  ;;  %v133_v43 = vshll.u32 %v124_v35, %v131_v14 }
  0xb4   :  { %v134_v44 = vshrl.u32 %v116_v40, %v132_v41  ;;  %v137_v32 = vadd.s32 127, %v136_v42 }
  0xb6   :  { %v135_v45 = vor.u32 %v134_v44, %v133_v43  ;;  %v138_v46 = vshll.u32 %v137_v32, 23 }
  0xb8   :  { %v139_v47 = vor.u32 4788187, %v138_v46  ;;  %v142_v49 = vcvt.s32.f32 %v135_v45 }
  0xba   :  { %v140_v48 = vand.u32 2147483647, %v139_v47 }
  0xbc   :  { %v143_v50 = vmul.f32 %v142_v49, %v140_v48 }
  0xbe   :  { %v144_v51 = vxor.u32 2147483648, %v143_v50 }
  0xc0   :  { %v145_v52 = vsel %vm24_vm12, %v144_v51, %v143_v50 }
  0xc1   :  { %v148_v54 = vsel %vm23_vm13, %v389_v4, %v145_v52 }
  0xc2   :  { %v150_v55 = vmul.f32 %v148_v54, %v148_v54 }
  0xc4   :  { %v151_v56 = vmul.f32 -0.001358992, %v150_v55  ;;  %v158_v57 = vmul.f32 -0.00019511016, %v150_v55 }
  0xc6   :  { %v152_v59 = vadd.f32 0.041655596, %v151_v56  ;;  %v159_v60 = vadd.f32 0.008332121, %v158_v57 }
  0xc8   :  { %v153_v62 = vmul.f32 %v152_v59, %v150_v55  ;;  %v160_v63 = vmul.f32 %v159_v60, %v150_v55 }
  0xca   :  { %v154_v1 = vadd.f32 -0.4999988, %v153_v62  ;;  %v161_v2 = vadd.f32 -0.16666654, %v160_v63 }
  0xcc   :  { %v155_v5 = vmul.f32 %v154_v1, %v150_v55  ;;  %v162_v6 = vmul.f32 %v161_v2, %v150_v55 }
  0xce   :  { %v156_v8 = vadd.f32 1.0, %v155_v5  ;;  %v163_v7 = vadd.f32 1.0, %v162_v6 }
  0xd0   :  { %v164_v11 = vmul.f32 %v163_v7, %v148_v54  ;;  %v173_v12 = vxor.u32 2147483648, %v156_v8 }
  0xd2   :  { %v170_v13 = vxor.u32 2147483648, %v164_v11  ;;  %v328_v18 = vsel %vm326_vm0, %v173_v12, %v164_v11  ;;  %v174_v20 = vsel %vm172_vm3, %v173_v12, %v164_v11 }
  0xd4   :  { %v325_v17 = vsel %vm323_vm15, %v156_v8, %v170_v13  ;;  %v171_v19 = vsel %vm169_vm2, %v156_v8, %v170_v13 }
  0xd5   :  { %v329_v21 = vsel %vm322_vm14, %v325_v17, %v328_v18  ;;  %v175_v22 = vsel %vm168_vm1, %v171_v19, %v174_v20 }
  0xd6   :  { %v330_v23 = vsel %vm165_vm5, nan, %v329_v21  ;;  %v176_v24 = vsel %vm165_vm5, nan, %v175_v22 }
  0xd7   :  { %334 = vrot.lane.b32.xlu0 %v330_v23, %s366_s0  ;;  %332 = vst.msk [vmem:[%s447_s2] sm:$0xff] %vm331_vm4, %v176_v24 }
 0x149   :  { %v335_v15 = vpop.permute.xlu0 %334 }
 0x14a   :  { %338 = vst.msk [vmem:[%s447_s2] sm:$0xff] %vm337_vm6, %v335_v15 }

</bundles_post_ra>
